<compile_context>
chip_gen: v7x
topology: tpu7x:2x2x1
jax: 0.10.0
libtpu: 0.0.40
codegen_flags: <defaults>
</compile_context>

<pallas_src>
import jax
import jax.numpy as jnp
from jax.experimental import pallas as pl
from jax.experimental.pallas import tpu as pltpu

_LANE = 128          # lane width: batch tiles on the lane axis are multiples of this
_SMALL_BATCH = 512   # at or below this, skip the grid/pad machinery entirely


def _round_up(n, m):
    return ((n + m - 1) // m) * m


def _softplus(x):
    # numerically-stable softplus matching torch.nn.functional.softplus
    # (beta=1, threshold=20): identity above threshold, log1p(exp(x)) below.
    return jnp.where(x > 20.0, x, jnp.log1p(jnp.exp(jnp.minimum(x, 20.0))))


def mlp_kernel(x_ref,
               w1_ref, b1_ref,
               w2_ref, b2_ref,
               wh_ref, bh_ref,
               out_ref):
    # x: (in_features, tile_b) -- batch on the lane axis.
    x = x_ref[...].astype(jnp.float32)                       # x = x.float()

    # Linear(input_size, hidden[0]) + ReLU
    h = jnp.dot(w1_ref[...], x, preferred_element_type=jnp.float32) + b1_ref[...]
    h = jnp.maximum(h, 0.0)

    # Linear(hidden[1], hidden[2]) + Tanh
    h = jnp.dot(w2_ref[...], h, preferred_element_type=jnp.float32) + b2_ref[...]
    h = jnp.tanh(h)

    # Fused mean|stdv heads: one MXU push, one lane-dense (2*out, tile_b) store.
    y = jnp.dot(wh_ref[...], h, preferred_element_type=jnp.float32) + bh_ref[...]
    out_ref[...] = _softplus(y)


def prepare_params(params):
    """Fuse the mean/stdv heads once (parameter-prep time, not per call).

    Weights are PyTorch-native (out_features, in_features); biases (out_features, 1).
    """
    (w1, b1), (w2, b2), (wm, bm), (ws, bs) = params
    wh = jnp.concatenate([wm, ws], axis=0)     # (2*out, hidden)
    bh = jnp.concatenate([bm, bs], axis=0)     # (2*out, 1)
    return (w1, b1, w2, b2, wh, bh)


def _cost_estimate(Bp, in_f, hid, out2):
    flops = 2 * Bp * (in_f * hid + hid * hid + hid * out2)
    transcendentals = Bp * (hid + 2 * out2)          # tanh + exp/log1p in softplus
    bytes_accessed = 4 * (Bp * in_f + in_f * hid + hid * hid + hid * out2
                          + 2 * hid + out2 + Bp * out2)
    return pl.CostEstimate(flops=flops, transcendentals=transcendentals,
                           bytes_accessed=bytes_accessed)


def mlp_forward(x, prepared_params, *, tile_b_max=2048):
    """Returns (action_means, action_stdv), matching MLP.forward with with_stdv=True."""
    w1, b1, w2, b2, wh, bh = prepared_params
    hid, in_f = w1.shape
    out2 = wh.shape[0]           # 2 * output_size
    out = out2 // 2

    B = x.shape[0]
    xt = x.astype(jnp.float32).T           # (in_f, B): batch -> lane axis (XLA-side)

    if B <= _SMALL_BATCH:
        # Latency regime: single whole-array block, no grid, no padding.
        fused = pl.pallas_call(
            mlp_kernel,
            out_shape=jax.ShapeDtypeStruct((out2, B), jnp.float32),
            cost_estimate=_cost_estimate(B, in_f, hid, out2),
        )(xt, w1, b1, w2, b2, wh, bh)
        return fused[:out, :].T, fused[out:, :].T

    # Large batch: lane-axis tiles (multiples of 128), sized from B to keep padding
    # low, with >= 2 grid steps so the "parallel" batch grid shards over v7x's 2 TCs.
    min_tiles = 2 if B >= 2 * _LANE else 1
    num_tiles = max(pl.cdiv(B, tile_b_max), min_tiles)
    tile_b = _round_up(pl.cdiv(B, num_tiles), _LANE)
    num_tiles = pl.cdiv(B, tile_b)                 # re-derive: rounding may drop a step
    Bp = num_tiles * tile_b
    if Bp != B:
        xt = jnp.pad(xt, ((0, 0), (0, Bp - B)))    # zero columns are benign downstream

    resident = lambda i: (0, 0)   # constant block index -> weights stay in VMEM

    fused = pl.pallas_call(
        mlp_kernel,
        out_shape=jax.ShapeDtypeStruct((out2, Bp), jnp.float32),
        grid_spec=pltpu.PrefetchScalarGridSpec(
            num_scalar_prefetch=0,
            grid=(num_tiles,),
            in_specs=[
                pl.BlockSpec((in_f, tile_b), lambda i: (0, i)),   # x: batch tiled on lanes
                pl.BlockSpec((hid, in_f), resident),              # w1 resident
                pl.BlockSpec((hid, 1), resident),                 # b1 resident
                pl.BlockSpec((hid, hid), resident),               # w2 resident
                pl.BlockSpec((hid, 1), resident),                 # b2 resident
                pl.BlockSpec((out2, hid), resident),              # fused head W
                pl.BlockSpec((out2, 1), resident),                # fused head b
            ],
            out_specs=pl.BlockSpec((out2, tile_b), lambda i: (0, i)),
        ),
        compiler_params=pltpu.CompilerParams(
            dimension_semantics=("parallel",)),      # shard batch grid over v7x's 2 TCs
        cost_estimate=_cost_estimate(Bp, in_f, hid, out2),
    )(xt, w1, b1, w2, b2, wh, bh)

    means_t = fused[:out, :B]
    stdvs_t = fused[out:, :B]
    return means_t.T, stdvs_t.T


def mlp_reference(x, params):
    # Pure-JAX reference mirroring the PyTorch forward exactly (W is (out, in)).
    (w1, b1), (w2, b2), (wm, bm), (ws, bs) = params
    xf = x.astype(jnp.float32)
    h = jnp.maximum(xf @ w1.T + b1.T, 0.0)
    h = jnp.tanh(h @ w2.T + b2.T)
    means = jax.nn.softplus(h @ wm.T + bm.T)
    stdvs = jax.nn.softplus(h @ ws.T + bs.T)
    return means, stdvs


def init_linear(key, fan_in, fan_out):
    # deterministic init mirroring nn.Linear's U(-1/sqrt(fan_in), 1/sqrt(fan_in)),
    # PyTorch-native layout: W (out, in), b (out, 1).
    kw, kb = jax.random.split(key)
    bound = 1.0 / jnp.sqrt(fan_in)
    w = jax.random.uniform(kw, (fan_out, fan_in), jnp.float32, -bound, bound)
    b = jax.random.uniform(kb, (fan_out, 1), jnp.float32, -bound, bound)
    return w, b


if __name__ == "__main__":
    # Module config: MLP(input_size=16, hidden_layer_sizes=[32, 32, 32],
    #                    output_size=8, activation_func=[ReLU(), Tanh()],
    #                    with_stdv=True)
    # MLP.__init__ builds Linear(input, h[0]) then Linear(h[i], h[i+1]) for
    # i in 1..len-2, so equal hidden sizes keep the shapes consistent.
    input_size, hidden, output_size, batch = 16, 32, 8, 8

    key = jax.random.PRNGKey(0)
    kx, k1, k2, km, ks, kx2 = jax.random.split(key, 6)

    params = (
        init_linear(k1, input_size, hidden),   # Linear(input_size, hidden[0])
        init_linear(k2, hidden, hidden),       # Linear(hidden[1], hidden[2])
        init_linear(km, hidden, output_size),  # mean_output
        init_linear(ks, hidden, output_size),  # stdv_output
    )
    prepared = prepare_params(params)

    # Small batch -> fast path (single block, no grid, no padding).
    x = jax.random.normal(kx, (batch, input_size), jnp.float32)
    means, stdvs = jax.block_until_ready(mlp_forward(x, prepared))
    ref_means, ref_stdvs = mlp_reference(x, params)
    assert means.shape == (batch, output_size)
    assert stdvs.shape == (batch, output_size)
    assert bool(jnp.all(means >= 0.0)) and bool(jnp.all(stdvs >= 0.0))
    assert bool(jnp.allclose(means, ref_means, atol=1e-5, rtol=1e-5))
    assert bool(jnp.allclose(stdvs, ref_stdvs, atol=1e-5, rtol=1e-5))

    # Larger batch -> tiled path (128-multiple lane tiles, >=2 parallel grid steps).
    big_batch = 600
    xb = jax.random.normal(kx2, (big_batch, input_size), jnp.float32)
    means_b, stdvs_b = jax.block_until_ready(mlp_forward(xb, prepared))
    ref_means_b, ref_stdvs_b = mlp_reference(xb, params)
    assert means_b.shape == (big_batch, output_size)
    assert stdvs_b.shape == (big_batch, output_size)
    assert bool(jnp.allclose(means_b, ref_means_b, atol=1e-5, rtol=1e-5))
    assert bool(jnp.allclose(stdvs_b, ref_stdvs_b, atol=1e-5, rtol=1e-5))

    print("KERNEL_OK")
</pallas_src>

<mosaic_0001>
module attributes {stable_mosaic.version = 11 : i64} {
  func.func @mlp_kernel(%arg0: memref<16x8xf32, #tpu.memory_space<vmem>>, %arg1: memref<32x16xf32, #tpu.memory_space<vmem>>, %arg2: memref<32x1xf32, #tpu.memory_space<vmem>>, %arg3: memref<32x32xf32, #tpu.memory_space<vmem>>, %arg4: memref<32x1xf32, #tpu.memory_space<vmem>>, %arg5: memref<16x32xf32, #tpu.memory_space<vmem>>, %arg6: memref<16x1xf32, #tpu.memory_space<vmem>>, %arg7: memref<16x8xf32, #tpu.memory_space<vmem>>) attributes {dimension_semantics = [], scalar_prefetch = 0 : i64, scratch_operands = 0 : i64, tpu.core_type = #tpu.core_type<tc>} {
    %c0 = arith.constant 0 : index
    %c0_0 = arith.constant 0 : index
    %0 = vector.load %arg0[%c0, %c0_0] : memref<16x8xf32, #tpu.memory_space<vmem>>, vector<16x8xf32>
    %c0_1 = arith.constant 0 : index
    %c0_2 = arith.constant 0 : index
    %1 = vector.load %arg1[%c0_1, %c0_2] : memref<32x16xf32, #tpu.memory_space<vmem>>, vector<32x16xf32>
    %cst = arith.constant dense<0.000000e+00> : vector<32x8xf32>
    %2 = tpu.matmul %1, %0, %cst {dimension_numbers = #tpu.dot_dimension_numbers<[1], [0], [0], [1], [0, 0, 1, 1], [], []>} : vector<32x16xf32>, vector<16x8xf32>, vector<32x8xf32> -> vector<32x8xf32>
    %c0_3 = arith.constant 0 : index
    %c0_4 = arith.constant 0 : index
    %3 = vector.load %arg2[%c0_3, %c0_4] : memref<32x1xf32, #tpu.memory_space<vmem>>, vector<32x1xf32>
    %4 = vector.broadcast %3 : vector<32x1xf32> to vector<32x8xf32>
    %5 = arith.addf %2, %4 : vector<32x8xf32>
    %cst_5 = arith.constant 0.000000e+00 : f32
    %6 = vector.broadcast %cst_5 : f32 to vector<32x8xf32>
    %7 = arith.maximumf %5, %6 : vector<32x8xf32>
    %c0_6 = arith.constant 0 : index
    %c0_7 = arith.constant 0 : index
    %8 = vector.load %arg3[%c0_6, %c0_7] : memref<32x32xf32, #tpu.memory_space<vmem>>, vector<32x32xf32>
    %cst_8 = arith.constant dense<0.000000e+00> : vector<32x8xf32>
    %9 = tpu.matmul %8, %7, %cst_8 {dimension_numbers = #tpu.dot_dimension_numbers<[1], [0], [0], [1], [0, 0, 1, 1], [], []>} : vector<32x32xf32>, vector<32x8xf32>, vector<32x8xf32> -> vector<32x8xf32>
    %c0_9 = arith.constant 0 : index
    %c0_10 = arith.constant 0 : index
    %10 = vector.load %arg4[%c0_9, %c0_10] : memref<32x1xf32, #tpu.memory_space<vmem>>, vector<32x1xf32>
    %11 = vector.broadcast %10 : vector<32x1xf32> to vector<32x8xf32>
    %12 = arith.addf %9, %11 : vector<32x8xf32>
    %13 = math.tanh %12 : vector<32x8xf32>
    %c0_11 = arith.constant 0 : index
    %c0_12 = arith.constant 0 : index
    %14 = vector.load %arg5[%c0_11, %c0_12] : memref<16x32xf32, #tpu.memory_space<vmem>>, vector<16x32xf32>
    %cst_13 = arith.constant dense<0.000000e+00> : vector<16x8xf32>
    %15 = tpu.matmul %14, %13, %cst_13 {dimension_numbers = #tpu.dot_dimension_numbers<[1], [0], [0], [1], [0, 0, 1, 1], [], []>} : vector<16x32xf32>, vector<32x8xf32>, vector<16x8xf32> -> vector<16x8xf32>
    %c0_14 = arith.constant 0 : index
    %c0_15 = arith.constant 0 : index
    %16 = vector.load %arg6[%c0_14, %c0_15] : memref<16x1xf32, #tpu.memory_space<vmem>>, vector<16x1xf32>
    %17 = vector.broadcast %16 : vector<16x1xf32> to vector<16x8xf32>
    %18 = arith.addf %15, %17 : vector<16x8xf32>
    %cst_16 = arith.constant 2.000000e+01 : f32
    %19 = vector.broadcast %cst_16 : f32 to vector<16x8xf32>
    %20 = arith.cmpf ogt, %18, %19 : vector<16x8xf32>
    %cst_17 = arith.constant 2.000000e+01 : f32
    %21 = vector.broadcast %cst_17 : f32 to vector<16x8xf32>
    %22 = arith.minimumf %18, %21 : vector<16x8xf32>
    %23 = math.exp %22 : vector<16x8xf32>
    %24 = math.log1p %23 : vector<16x8xf32>
    %25 = arith.select %20, %18, %24 : vector<16x8xi1>, vector<16x8xf32>
    %c0_18 = arith.constant 0 : index
    %c0_19 = arith.constant 0 : index
    %26 = vector.load %arg7[%c0_18, %c0_19] : memref<16x8xf32, #tpu.memory_space<vmem>>, vector<16x8xf32>
    tpu.vector_store %arg7[%c0_18, %c0_19], %25 {strides = array<i32>} : memref<16x8xf32, #tpu.memory_space<vmem>>, vector<16x8xf32>,
    return
  }
}

</mosaic_0001>

<bundles_post_ra>
// kernel: tpu_custom_call.1
= control target key start
LH: loop header
LB: loop body
LE: loop exit
PB: predicated region body
PF: predicated region fallthrough
CT: control target
= control target key end

     0   :  { %vm56_vm0 = vcmask 130048   ;;  %v522_v3 = vmov 0   ;;  %vm186_vm1 = vcmask 261120   ;;  %vm411_vm3 = vcmask 64512   ;;  %s645_s0 = inlined_call_operand.vmem [shape: f32[16,8], index: 0, kind: input, shape index: {}]   ;;  %s646_s1 = inlined_call_operand.vmem [shape: f32[32,16], index: 1, kind: input, shape index: {}]   ;;  %s647_s2 = inlined_call_operand.vmem [shape: f32[32,1], index: 2, kind: input, shape index: {}]   ;;  %s648_s4 = inlined_call_operand.vmem [shape: f32[32,1], index: 4, kind: input, shape index: {}]   ;;  %s649_s6 = inlined_call_operand.vmem [shape: f32[16,1], index: 6, kind: input, shape index: {}]   ;;  %s650_s3 = inlined_call_operand.vmem [shape: f32[32,32], index: 3, kind: input, shape index: {}]   ;;  %s651_s5 = inlined_call_operand.vmem [shape: f32[16,32], index: 5, kind: input, shape index: {}]   ;;  %s652_s7 = inlined_call_operand.vmem [shape: f32[16,8], index: 7, kind: output, shape index: {}]  }
   0x1   :  { %v26_v0 = vld [vmem:[%s645_s0] sm:$0xff]  ;;  %v27_v1 = vld [vmem:[%s645_s0 + $0x8] sm:$0xff]  ;;  %504 = vset.pattern.permute.xlu0 %v522_v3  ;;  %505 = vset.pattern.permute.xlu1 %v522_v3  ;;  %v34_v6 = vld [vmem:[%s647_s2 + $0x10] sm:$0xff] }
   0x2   :  { %v28_v2 = vld [vmem:[%s646_s1] sm:$0xff]  ;;  %v483_v4 = vpack.c.bf16 %v27_v1, %v26_v0  ;;  %v29_v7 = vld [vmem:[%s646_s1 + $0x8] sm:$0xff]  ;;  %48 = vperm.xlu1 %505, %v34_v6   ;;  %v30_v9 = vld [vmem:[%s646_s1 + $0x10] sm:$0xff] }
   0x3   :  { %452 = vmatprep.mubr.msk.f32.mxu0 %vm56_vm0, %v28_v2  ;;  %v32_v5 = vld [vmem:[%s647_s2] sm:$0xff]  ;;  %v33_v8 = vld [vmem:[%s647_s2 + $0x8] sm:$0xff]  ;;  %v35_v10 = vld [vmem:[%s647_s2 + $0x18] sm:$0xff] }
   0x4   :  { %484 = vmatprep.subr.bf16.mxu0 %v483_v4  ;;  %38 = vperm.xlu0 %504, %v32_v5   ;;  %v31_v11 = vld [vmem:[%s646_s1 + $0x18] sm:$0xff]  ;;  %v162_v12 = vld [vmem:[%s648_s4] sm:$0xff]  ;;  %v163_v13 = vld [vmem:[%s648_s4 + $0x8] sm:$0xff] }
   0x5   :  { %486 = vmatpush3.bf16.msra.mxu0 %v483_v4  ;;  %v164_v14 = vld [vmem:[%s648_s4 + $0x10] sm:$0xff]  ;;  %v165_v15 = vld [vmem:[%s648_s4 + $0x18] sm:$0xff]  ;;  %v290_v16 = vld [vmem:[%s649_s6] sm:$0xff] }
   0x6   :  { %53 = vperm.xlu1 %505, %v35_v10   ;;  %v291_v17 = vld [vmem:[%s649_s6 + $0x8] sm:$0xff]  ;;  %v158_v18 = vld [vmem:[%s650_s3] sm:$0xff]  ;;  %v160_v38 = vld [vmem:[%s650_s3 + $0x10] sm:$0xff] }
   0x7   :  { %466 = vmatprep.mubr.msk.f32.mxu1 %vm186_vm1, %v158_v18  ;;  %v159_v37 = vld [vmem:[%s650_s3 + $0x8] sm:$0xff]  ;;  %v161_v39 = vld [vmem:[%s650_s3 + $0x18] sm:$0xff]  ;;  %v288_v40 = vld [vmem:[%s651_s5] sm:$0xff] }
   0x8   :  { %453 = vmatmul.mubr.msk.f32.vlgmr.msra.gmra.mrb[0].mxu0 %vm56_vm0, %v29_v7  ;;  %43 = vperm.xlu0 %504, %v33_v8   ;;  %v289_v59 = vld [vmem:[%s651_s5 + $0x8] sm:$0xff] }
   0x9   :  { %455 = vmatprep.mubr.msk.f32.mxu0 %vm56_vm0, %v30_v9 }
   0xa   :  { %173 = vperm.xlu1 %505, %v163_v13  }
   0xc   :  { %456 = vmatmul.mubr.msk.f32.gmra.mrb[2].mxu0 %vm56_vm0, %v31_v11  ;;  %168 = vperm.xlu0 %504, %v162_v12  }
   0xd   :  { %480 = vmatprep.mubr.msk.f32.mxu0 %vm186_vm1, %v288_v40 }
   0xe   :  { %183 = vperm.xlu1 %505, %v165_v15  }
  0x10   :  { %178 = vperm.xlu0 %504, %v164_v14  }
  0x12   :  { %299 = vperm.xlu1 %505, %v291_v17  }
  0x14   :  { %294 = vperm.xlu0 %504, %v290_v16  }
  0x81   :  { %v49_v20 = vpop.permute.xlu1 %48 }
  0x83   :  { %v39_v19 = vpop.permute.xlu0 %38 }
  0x85   :  { %v54_v27 = vpop.permute.xlu1 %53 }
  0x87   :  { %v44_v21 = vpop.permute.xlu0 %43 }
  0x89   :  { %v174_v41 = vpop.permute.xlu1 %173 }
  0x8b   :  { %v169_v42 = vpop.permute.xlu0 %168 }
  0x8d   :  { %v184_v47 = vpop.permute.xlu1 %183 }
  0x8f   :  { %v179_v49 = vpop.permute.xlu0 %178 }
  0x91   :  { %v300_v60 = vpop.permute.xlu1 %299 }
  0x93   :  { %v295_v62 = vpop.permute.xlu0 %294 }
  0xdb   :  { %v454_v22 = vpop.f32.mrb[0].mxu0 }
  0xdc   :  { %v141_v23 = vadd.f32 %v454_v22, %v44_v21  ;;  %v135_v24 = vpop.f32.mrb[1].mxu0 }
  0xdd   :  { %v136_v25 = vadd.f32 %v135_v24, %v39_v19 }
  0xde   :  { %v155_v26 = vmax.f32 %v141_v23, 0.0 }
  0xdf   :  { %v154_v28 = vmax.f32 %v136_v25, 0.0  ;;  %v457_v29 = vpop.f32.mrb[2].mxu0 }
  0xe0   :  { %v151_v30 = vadd.f32 %v457_v29, %v54_v27  ;;  %v145_v31 = vpop.f32.mrb[3].mxu0 }
  0xe1   :  { %v146_v32 = vadd.f32 %v145_v31, %v49_v20  ;;  %v487_v33 = vpack.c.bf16 %v155_v26, %v154_v28 }
  0xe2   :  { %v157_v34 = vmax.f32 %v151_v30, 0.0 }
  0xe3   :  { %v156_v35 = vmax.f32 %v146_v32, 0.0  ;;  %488 = vmatprep.subr.bf16.mxu1 %v487_v33 }
  0xe4   :  { %490 = vmatpush3.bf16.msra.mxu1 %v487_v33 }
  0xe5   :  { %v491_v36 = vpack.c.bf16 %v157_v34, %v156_v35 }
  0xe7   :  { %492 = vmatprep.subr.bf16.mxu1 %v491_v36 }
  0xe8   :  { %494 = vmatpush3.bf16.msra.mxu1 %v491_v36 }
  0xeb   :  { %467 = vmatmul.mubr.msk.f32.vlgmr.msra.gmra.mrb[0].mxu1 %vm186_vm1, %v159_v37 }
  0xec   :  { %469 = vmatprep.mubr.msk.f32.mxu1 %vm186_vm1, %v160_v38 }
  0xef   :  { %470 = vmatmul.mubr.msk.f32.gmra.mrb[2].mxu1 %vm186_vm1, %v161_v39 }
 0x1be   :  { %v468_v43 = vpop.f32.mrb[0].mxu1 }
 0x1bf   :  { %v271_v44 = vadd.f32 %v468_v43, %v174_v41  ;;  %v265_v45 = vpop.f32.mrb[1].mxu1 }
 0x1c0   :  { %v266_v46 = vadd.f32 %v265_v45, %v169_v42 }
 0x1c1   :  { %506 = vtanh.f32 %v271_v44 }
 0x1c2   :  { %508 = vtanh.f32 %v266_v46  ;;  %v471_v48 = vpop.f32.mrb[2].mxu1 }
 0x1c3   :  { %v281_v50 = vadd.f32 %v471_v48, %v184_v47  ;;  %v275_v51 = vpop.f32.mrb[3].mxu1 }
 0x1c4   :  { %v276_v52 = vadd.f32 %v275_v51, %v179_v49 }
 0x1c5   :  { %510 = vtanh.f32 %v281_v50 }
 0x1c6   :  { %512 = vtanh.f32 %v276_v52 }
 0x1cb   :  { %v507_v53 = vpop.eup %506 }
 0x1cc   :  { %v509_v54 = vpop.eup %508 }
 0x1cd   :  { %v495_v55 = vpack.c.bf16 %v507_v53, %v509_v54 }
 0x1cf   :  { %v511_v56 = vpop.eup %510  ;;  %496 = vmatprep.subr.bf16.mxu0 %v495_v55 }
 0x1d0   :  { %v513_v57 = vpop.eup %512  ;;  %498 = vmatpush3.bf16.msra.mxu0 %v495_v55 }
 0x1d1   :  { %v499_v58 = vpack.c.bf16 %v511_v56, %v513_v57 }
 0x1d3   :  { %500 = vmatprep.subr.bf16.mxu0 %v499_v58 }
 0x1d4   :  { %502 = vmatpush3.bf16.msra.mxu0 %v499_v58 }
 0x1d7   :  { %481 = vmatmul.mubr.msk.f32.vlgmr.msra.gmra.mrb[4].mxu0 %vm186_vm1, %v289_v59 }
 0x2aa   :  { %v482_v61 = vpop.f32.mrb[4].mxu0 }
 0x2ab   :  { %v380_v63 = vadd.f32 %v482_v61, %v300_v60  ;;  %v374_v0 = vpop.f32.mrb[5].mxu0 }
 0x2ac   :  { %v375_v1 = vadd.f32 %v374_v0, %v295_v62 }
 0x2ad   :  { %v386_v2 = vmin.f32 %v380_v63, 20.0  ;;  %vm384_vm4 = vcmp.gt.f32.partialorder %v380_v63, 20.0 }
 0x2ae   :  { %v385_v3 = vmin.f32 %v375_v1, 20.0  ;;  %vm383_vm6 = vcmp.gt.f32.partialorder %v375_v1, 20.0 }
 0x2af   :  { %v389_v4 = vmul.f32 1.442695, %v386_v2 }
 0x2b0   :  { %v387_v5 = vmul.f32 1.442695, %v385_v3 }
 0x2b1   :  { %514 = vpow2.f32 %v389_v4 }
 0x2b2   :  { %516 = vpow2.f32 %v387_v5 }
 0x2bb   :  { %v515_v6 = vpop.eup %514 }
 0x2bc   :  { %v517_v7 = vpop.eup %516  ;;  %v400_v8 = vadd.f32 1.0, %v515_v6  ;;  %v403_v10 = vmul.f32 -0.5, %v515_v6  ;;  %v406_v13 = vand.u32 2147483647, %v515_v6 }
 0x2bd   :  { %v391_v9 = vadd.f32 1.0, %v517_v7  ;;  %v394_v11 = vmul.f32 -0.5, %v517_v7  ;;  %v397_v15 = vand.u32 2147483647, %v517_v7 }
 0x2be   :  { %518 = vlog2.f32 %v400_v8  ;;  %v404_v12 = vadd.f32 1.0, %v403_v10  ;;  %vm407_vm2 = vcmp.lt.f32.partialorder %v406_v13, 0.0004427343 }
 0x2bf   :  { %520 = vlog2.f32 %v391_v9  ;;  %v395_v14 = vadd.f32 1.0, %v394_v11  ;;  %vm398_vm5 = vcmp.lt.f32.partialorder %v397_v15, 0.0004427343 }
 0x2c0   :  { %v405_v19 = vmul.f32 %v515_v6, %v404_v12 }
 0x2c1   :  { %v396_v21 = vmul.f32 %v517_v7, %v395_v14 }
 0x2c8   :  { %v519_v16 = vpop.eup %518 }
 0x2c9   :  { %v521_v17 = vpop.eup %520  ;;  %v402_v18 = vmul.f32 0.6931472, %v519_v16 }
 0x2ca   :  { %v393_v20 = vmul.f32 0.6931472, %v521_v17 }
 0x2cb   :  { %v408_v22 = vsel %vm407_vm2, %v405_v19, %v402_v18 }
 0x2cc   :  { %v410_v23 = vsel %vm384_vm4, %v380_v63, %v408_v22  ;;  %v399_v24 = vsel %vm398_vm5, %v396_v21, %v393_v20 }
 0x2cd   :  { %413 = vst.msk [vmem:[%s652_s7 + $0x8] sm:$0xff] %vm411_vm3, %v410_v23  ;;  %v409_v25 = vsel %vm383_vm6, %v375_v1, %v399_v24 }
 0x2ce   :  { %412 = vst.msk [vmem:[%s652_s7] sm:$0xff] %vm411_vm3, %v409_v25 }

</bundles_post_ra>
